<compile_context>
chip_gen: v6e
topology: v6e:2x2x1
jax: 0.10.0
libtpu: 0.0.40
codegen_flags: <defaults>
</compile_context>

<pallas_src>
import functools
import numpy as np

import jax
import jax.numpy as jnp
from jax.experimental import pallas as pl
from jax.experimental.pallas import tpu as pltpu


# ----------------------------------------------------------------------------
# Trace-time constant matrices
# ----------------------------------------------------------------------------
def _gaussian_1d(kernel_size: int, sigma: float) -> np.ndarray:
    """Normalized 1-D Gaussian; outer(r, r) == the module's 2-D kernel exactly."""
    x = np.arange(kernel_size, dtype=np.float64)
    mean = (kernel_size - 1) / 2.0
    v = np.exp(-((x - mean) ** 2) / (2.0 * sigma ** 2))
    return (v / v.sum())


def _nearest_upsample_matrix(n_in: int, scale: int) -> np.ndarray:
    """(n_in*scale, n_in) 0/1 matrix:  (U @ x) replicates rows `scale` times."""
    n_out = n_in * scale
    m = np.zeros((n_out, n_in), np.float32)
    m[np.arange(n_out), np.arange(n_out) // scale] = 1.0
    return m


def _gaussian_band_matrix(n: int, kernel_size: int, sigma: float) -> np.ndarray:
    """Banded matrix B with B[i, m] = g1d[m - i + pad]; encodes 'same' conv with
    zero padding of width pad along one axis."""
    pad = (kernel_size - 1) // 2
    r = _gaussian_1d(kernel_size, sigma)
    b = np.zeros((n, n), np.float64)
    for i in range(n):
        lo = max(0, i - pad)
        hi = min(n, i + pad + 1)
        for m in range(lo, hi):
            b[i, m] = r[m - i + pad]
    return b.astype(np.float32)


# ----------------------------------------------------------------------------
# Kernel
# ----------------------------------------------------------------------------
def _phosphene_kernel(stim_ref, mask_ref, uh_ref, uw_ref, gh_ref, gw_ref,
                      out_ref, *, block_batch):
    """One grid step processes `block_batch` images.

    stim_ref : (bb, 1, h, w)        raw stimulation (tiny)
    mask_ref : (h_up, w_up)         pMask (resident, constant index_map)
    uh_ref   : (h_up, h)            row nearest-upsample matrix
    uw_ref   : (w, w_up)            column nearest-upsample matrix
    gh_ref   : (h_up, h_up)         row Gaussian band matrix (intensity folded in)
    gw_ref   : (w_up, w_up)         column Gaussian band matrix
    out_ref  : (bb, 1, h_up, w_up)
    """
    m = mask_ref[...]
    uh = uh_ref[...]
    uw = uw_ref[...]
    gh = gh_ref[...]
    gw = gw_ref[...]

    for i in range(block_batch):
        x = stim_ref[i, 0]                                               # (h, w)
        # nearest-neighbor upsample via 0/1 replication matmuls (MXU)
        rows = jnp.dot(uh, x, preferred_element_type=jnp.float32)        # (h_up, w)
        up = jnp.dot(rows, uw, preferred_element_type=jnp.float32)       # (h_up, w_up)
        # phosphene location sampling (VPU)
        masked = up * m                                                  # (h_up, w_up)
        # separable 11x11 Gaussian "same" conv as two banded matmuls (MXU);
        # zero padding + intensity scaling are baked into gh/gw.
        tmp = jnp.dot(gh, masked, preferred_element_type=jnp.float32)    # row pass
        blurred = jnp.dot(tmp, gw, preferred_element_type=jnp.float32)   # col pass
        out_ref[i, 0] = blurred.astype(out_ref.dtype)


# ----------------------------------------------------------------------------
# Wrapper
# ----------------------------------------------------------------------------
def phosphene_simulator(stimulation, pMask, *, scale_factor=8, sigma=1.5,
                        kernel_size=11, intensity=15.0, block_batch=None):
    """JAX/Pallas equivalent of E2E_PhospheneSimulator.forward."""
    n, c, h, w = stimulation.shape
    assert c == 1, "Gaussian layer is built with channels=1"
    h_up, w_up = h * scale_factor, w * scale_factor
    assert pMask.shape == (h_up, w_up), "pMask must match upsampled resolution"

    # Per-step batch blocking: amortize per-step overhead (v6e) while keeping
    # at least 2 grid steps so both v7x TensorCores get work.
    if block_batch is None:
        block_batch = 2 if (n >= 4 and n % 2 == 0) else 1
    assert n % block_batch == 0, "batch must be divisible by block_batch"
    grid = (n // block_batch,)

    # Constant matrices (baked at trace time, streamed once into VMEM).
    uh = jnp.asarray(_nearest_upsample_matrix(h, scale_factor))            # (h_up, h)
    uw = jnp.asarray(_nearest_upsample_matrix(w, scale_factor).T)          # (w, w_up)
    gh = jnp.asarray(float(intensity)
                     * _gaussian_band_matrix(h_up, kernel_size, sigma))    # (h_up, h_up)
    gw = jnp.asarray(_gaussian_band_matrix(w_up, kernel_size, sigma).T)    # (w_up, w_up)

    stim_f32 = stimulation.astype(jnp.float32)
    mask_f32 = pMask.astype(jnp.float32)

    kernel = functools.partial(_phosphene_kernel, block_batch=block_batch)

    out = pl.pallas_call(
        kernel,
        out_shape=jax.ShapeDtypeStruct((n, c, h_up, w_up), stimulation.dtype),
        grid_spec=pltpu.PrefetchScalarGridSpec(
            num_scalar_prefetch=0,
            grid=grid,
            in_specs=[
                # Only the raw stimulation advances with the grid.
                pl.BlockSpec((block_batch, 1, h, w), lambda b: (b, 0, 0, 0)),
                # Batch-invariant operands: constant block index -> fetched once.
                pl.BlockSpec((h_up, w_up), lambda b: (0, 0)),
                pl.BlockSpec((h_up, h), lambda b: (0, 0)),
                pl.BlockSpec((w, w_up), lambda b: (0, 0)),
                pl.BlockSpec((h_up, h_up), lambda b: (0, 0)),
                pl.BlockSpec((w_up, w_up), lambda b: (0, 0)),
            ],
            out_specs=pl.BlockSpec((block_batch, 1, h_up, w_up),
                                   lambda b: (b, 0, 0, 0)),
        ),
        compiler_params=pltpu.CompilerParams(
            dimension_semantics=("parallel",)),
    )(stim_f32, mask_f32, uh, uw, gh, gw)
    return out


# ----------------------------------------------------------------------------
# Example run
# ----------------------------------------------------------------------------
if __name__ == "__main__":
    key = jax.random.PRNGKey(0)
    k_stim, k_mask = jax.random.split(key)

    # Small shapes consistent with the module: 16x16 feature map -> 128x128.
    batch, chans, hw = 2, 1, 16
    scale_factor = 8
    stimulation = jax.random.uniform(k_stim, (batch, chans, hw, hw),
                                     dtype=jnp.float32)
    # pMask: binary phosphene-location mask at upsampled resolution.
    pMask = (jax.random.uniform(
        k_mask, (hw * scale_factor, hw * scale_factor)) < 0.1
    ).astype(jnp.float32)

    out = phosphene_simulator(stimulation, pMask,
                              scale_factor=scale_factor,
                              sigma=1.5, kernel_size=11, intensity=15.0)
    jax.block_until_ready(out)
    assert out.shape == (batch, chans, hw * scale_factor, hw * scale_factor)
    assert bool(jnp.all(jnp.isfinite(out)))
    print("KERNEL_OK")
</pallas_src>

<mosaic_0001>
module attributes {stable_mosaic.version = 11 : i64} {
  func.func @_phosphene_kernel(%arg0: i32, %arg1: memref<1x1x16x16xf32, #tpu.memory_space<vmem>>, %arg2: memref<128x128xf32, #tpu.memory_space<vmem>>, %arg3: memref<128x16xf32, #tpu.memory_space<vmem>>, %arg4: memref<16x128xf32, #tpu.memory_space<vmem>>, %arg5: memref<128x128xf32, #tpu.memory_space<vmem>>, %arg6: memref<128x128xf32, #tpu.memory_space<vmem>>, %arg7: memref<1x1x128x128xf32, #tpu.memory_space<vmem>>) attributes {dimension_semantics = [#tpu.dimension_semantics<parallel>], iteration_bounds = array<i64: 2>, scalar_prefetch = 0 : i64, scratch_operands = 0 : i64, tpu.core_type = #tpu.core_type<tc>, window_params = [{transform_indices = @transform_0, window_bounds = array<i64: 1, 1, 16, 16>}, {pipeline_mode = #tpu.pipeline_mode<synchronous>, transform_indices = @transform_1, window_bounds = array<i64: 128, 128>}, {pipeline_mode = #tpu.pipeline_mode<synchronous>, transform_indices = @transform_2, window_bounds = array<i64: 128, 16>}, {pipeline_mode = #tpu.pipeline_mode<synchronous>, transform_indices = @transform_3, window_bounds = array<i64: 16, 128>}, {pipeline_mode = #tpu.pipeline_mode<synchronous>, transform_indices = @transform_4, window_bounds = array<i64: 128, 128>}, {pipeline_mode = #tpu.pipeline_mode<synchronous>, transform_indices = @transform_5, window_bounds = array<i64: 128, 128>}, {transform_indices = @transform_6, window_bounds = array<i64: 1, 1, 128, 128>}]} {
    %c0 = arith.constant 0 : index
    %c0_0 = arith.constant 0 : index
    %0 = vector.load %arg2[%c0, %c0_0] : memref<128x128xf32, #tpu.memory_space<vmem>>, vector<128x128xf32>
    %c0_1 = arith.constant 0 : index
    %c0_2 = arith.constant 0 : index
    %1 = vector.load %arg3[%c0_1, %c0_2] : memref<128x16xf32, #tpu.memory_space<vmem>>, vector<128x16xf32>
    %c0_3 = arith.constant 0 : index
    %c0_4 = arith.constant 0 : index
    %2 = vector.load %arg4[%c0_3, %c0_4] : memref<16x128xf32, #tpu.memory_space<vmem>>, vector<16x128xf32>
    %c0_5 = arith.constant 0 : index
    %c0_6 = arith.constant 0 : index
    %3 = vector.load %arg5[%c0_5, %c0_6] : memref<128x128xf32, #tpu.memory_space<vmem>>, vector<128x128xf32>
    %c0_7 = arith.constant 0 : index
    %c0_8 = arith.constant 0 : index
    %4 = vector.load %arg6[%c0_7, %c0_8] : memref<128x128xf32, #tpu.memory_space<vmem>>, vector<128x128xf32>
    %c0_9 = arith.constant 0 : index
    %c0_10 = arith.constant 0 : index
    %c0_11 = arith.constant 0 : index
    %c0_12 = arith.constant 0 : index
    %5 = vector.load %arg1[%c0_9, %c0_10, %c0_11, %c0_12] : memref<1x1x16x16xf32, #tpu.memory_space<vmem>>, vector<1x1x16x16xf32>
    %6 = vector.shape_cast %5 : vector<1x1x16x16xf32> to vector<16x16xf32>
    %cst = arith.constant dense<0.000000e+00> : vector<128x16xf32>
    %7 = tpu.matmul %1, %6, %cst {dimension_numbers = #tpu.dot_dimension_numbers<[1], [0], [0], [1], [0, 0, 1, 1], [], []>} : vector<128x16xf32>, vector<16x16xf32>, vector<128x16xf32> -> vector<128x16xf32>
    %cst_13 = arith.constant dense<0.000000e+00> : vector<128x128xf32>
    %8 = tpu.matmul %7, %2, %cst_13 {dimension_numbers = #tpu.dot_dimension_numbers<[1], [0], [0], [1], [0, 0, 1, 1], [], []>} : vector<128x16xf32>, vector<16x128xf32>, vector<128x128xf32> -> vector<128x128xf32>
    %9 = arith.mulf %8, %0 : vector<128x128xf32>
    %cst_14 = arith.constant dense<0.000000e+00> : vector<128x128xf32>
    %10 = tpu.matmul %3, %9, %cst_14 {dimension_numbers = #tpu.dot_dimension_numbers<[1], [0], [0], [1], [0, 0, 1, 1], [], []>} : vector<128x128xf32>, vector<128x128xf32>, vector<128x128xf32> -> vector<128x128xf32>
    %cst_15 = arith.constant dense<0.000000e+00> : vector<128x128xf32>
    %11 = tpu.matmul %10, %4, %cst_15 {dimension_numbers = #tpu.dot_dimension_numbers<[1], [0], [0], [1], [0, 0, 1, 1], [], []>} : vector<128x128xf32>, vector<128x128xf32>, vector<128x128xf32> -> vector<128x128xf32>
    %c0_16 = arith.constant 0 : index
    %c0_17 = arith.constant 0 : index
    %c0_18 = arith.constant 0 : index
    %c0_19 = arith.constant 0 : index
    %12 = vector.load %arg7[%c0_16, %c0_17, %c0_18, %c0_19] : memref<1x1x128x128xf32, #tpu.memory_space<vmem>>, vector<1x1x128x128xf32>
    %13 = vector.shape_cast %12 : vector<1x1x128x128xf32> to vector<128x128xf32>
    %14 = vector.shape_cast %11 : vector<128x128xf32> to vector<1x1x128x128xf32>
    tpu.vector_store %arg7[%c0_16, %c0_17, %c0_18, %c0_19], %14 {strides = array<i32>} : memref<1x1x128x128xf32, #tpu.memory_space<vmem>>, vector<1x1x128x128xf32>,
    return
  }
  func.func @transform_0(%arg0: i32) -> (i32, i32, i32, i32) {
    %c0_i32 = arith.constant 0 : i32
    %c0_i32_0 = arith.constant 0 : i32
    %c0_i32_1 = arith.constant 0 : i32
    %c0_i32_2 = arith.constant 0 : i32
    return %arg0, %c0_i32, %c0_i32_0, %c0_i32_1 : i32, i32, i32, i32
  }
  func.func @transform_1(%arg0: i32) -> (i32, i32) {
    %c0_i32 = arith.constant 0 : i32
    %c0_i32_0 = arith.constant 0 : i32
    %c0_i32_1 = arith.constant 0 : i32
    return %c0_i32, %c0_i32_0 : i32, i32
  }
  func.func @transform_2(%arg0: i32) -> (i32, i32) {
    %c0_i32 = arith.constant 0 : i32
    %c0_i32_0 = arith.constant 0 : i32
    %c0_i32_1 = arith.constant 0 : i32
    return %c0_i32, %c0_i32_0 : i32, i32
  }
  func.func @transform_3(%arg0: i32) -> (i32, i32) {
    %c0_i32 = arith.constant 0 : i32
    %c0_i32_0 = arith.constant 0 : i32
    %c0_i32_1 = arith.constant 0 : i32
    return %c0_i32, %c0_i32_0 : i32, i32
  }
  func.func @transform_4(%arg0: i32) -> (i32, i32) {
    %c0_i32 = arith.constant 0 : i32
    %c0_i32_0 = arith.constant 0 : i32
    %c0_i32_1 = arith.constant 0 : i32
    return %c0_i32, %c0_i32_0 : i32, i32
  }
  func.func @transform_5(%arg0: i32) -> (i32, i32) {
    %c0_i32 = arith.constant 0 : i32
    %c0_i32_0 = arith.constant 0 : i32
    %c0_i32_1 = arith.constant 0 : i32
    return %c0_i32, %c0_i32_0 : i32, i32
  }
  func.func @transform_6(%arg0: i32) -> (i32, i32, i32, i32) {
    %c0_i32 = arith.constant 0 : i32
    %c0_i32_0 = arith.constant 0 : i32
    %c0_i32_1 = arith.constant 0 : i32
    %c0_i32_2 = arith.constant 0 : i32
    return %arg0, %c0_i32, %c0_i32_0, %c0_i32_1 : i32, i32, i32, i32
  }
}

</mosaic_0001>

<bundles_post_ra>
// kernel: tpu_custom_call.1
= control target key start
LH: loop header
LB: loop body
LE: loop exit
PB: predicated region body
PF: predicated region fallthrough
CT: control target
= control target key end

     0   :  { %11 = vsyncpa [#allocation3], 0  ;;  %s2126_s0 = inlined_call_operand.hbm [shape: f32[2,1,16,16], index: 0, kind: input, shape index: {}]   ;;  %s2127_s1 = inlined_call_operand.vmem [shape: f32[128,128], index: 1, kind: input, shape index: {}]   ;;  %s2128_s2 = inlined_call_operand.vmem [shape: f32[128,16], index: 2, kind: input, shape index: {}]   ;;  %s2129_s3 = inlined_call_operand.vmem [shape: f32[16,128], index: 3, kind: input, shape index: {}]   ;;  %s2130_s4 = inlined_call_operand.hbm [shape: f32[128,128], index: 4, kind: input, shape index: {}]   ;;  %s2131_s5 = inlined_call_operand.hbm [shape: f32[128,128], index: 5, kind: input, shape index: {}]   ;;  %s2132_s6 = inlined_call_operand.hbm [shape: f32[2,1,128,128], index: 6, kind: output, shape index: {}]  }
   0x1   :  { %13 = vsyncpa [#allocation3 + $0x1], 0 }
   0x2   :  { %14 = vsyncpa [#allocation6], 0 }
   0x3   :  { %15 = vsyncpa [#allocation4], 0 }
   0x4   :  { %17 = vsyncpa [#allocation4 + $0x1], 0  ;;  %s1766_s21 = smov 0   ;;  %s1768_s22 = smov 0  }
   0x5   :  { %s1770_s23 = smov 0   ;;  %s1772_s24 = smov 0  }
   0x6 LB: > { %s1787_s25 = sadd.s32 4294967295, %s1721_s24   ;;  %s1182_s26 = sadd.s32 4294967294, %s1721_s24   ;;  %s1721_s24 = sphi %s1772_s24, %s2157_s24   ;;  %s1717_s23 = sphi %s1770_s23, %s2156_s23   ;;  %s1713_s22 = sphi %s1768_s22, %s2155_s22   ;;  %s1709_s21 = sphi %s1766_s21, %s2154_s21  }
   0x7   : > { %p43_p0 = scmp.ne.s32.totalorder %s1713_s22, %s1709_s21  ;;  %p2133_p1 = scmp.eq.s32.totalorder %s1787_s25, 0 }
   0x8   : > { %p172_p2 = scmp.eq.s32.totalorder %s1787_s25, 1  ;;  %p178_p3 = scmp.eq.s32.totalorder %s1182_s26, 1 }
   0x9   : > { %p1796_p4 = por %p2133_p1, %p43_p0  ;;  %p1183_p5 = scmp.ge.s32.totalorder %s1721_s24, 1 }
   0xa   : > { %p1801_p6 = por %p178_p3, %p43_p0  ;;  %p185_p7 = scmp.lt.s32.totalorder %s1721_s24, 3 }
   0xb   : > { %s2139_s27 = scalar_select %p1796_p4, 1, 0 }
   0xc   : > { %s2140_s28 = scalar_select %p1801_p6, 1, 0 }
   0xd   : > { %p1806_p8 = pnand %p1183_p5, %p185_p7  ;;  %s1723_s30 = smov [#allocation5]  }
   0xe   : > { %s206_s7 = sshll.u32 %s1723_s30, 4  ;;  %s1724_s9 = smov [#allocation7]   ;;  %s207_s7 = int_to_ptr.vmem [resolvable:$true] %s206_s7 }
   0xf   : > { %s2141_s29 = scalar_select %p1806_p8, 1, 0 }
  0x10   : > { %p1514_p9 = pneg %p1806_p8  ;;  %s219_s10 = sshll.u32 %s1724_s9, 4  ;;  %s220_s10 = int_to_ptr.vmem [resolvable:$true] %s219_s10 }
  0x11   : > { %s1584_s11 = scalar_lea.vmem %s207_s7, 2048  ;;  %p1592_p5 = scmp.lt.s32.totalorder %s207_s7, %s207_s7 }
  0x12   : > { %p1815_p11 = pnand %p1514_p9, %p2133_p1  ;;  %p1585_p13 = scmp.ne.s32.totalorder %s207_s7, %s1584_s11 }
  0x13   : > { %p1593_p7 = scmp.lt.s32.totalorder %s1584_s11, %s1584_s11 }
  0x14   : > { %p1575_p12 = pneg %p1815_p11 }
  0x15   : > { %p1594_p10 = por %p1593_p7, %p1592_p5 }
  0x16   : > { %p1587_p0 = pnand %p1585_p13, %p1575_p12 }
  0x18   : > { %p1588_p3 = pneg %p1587_p0 }
  0x1a   : > { %p1595_p9 = pnand %p1594_p10, %p1588_p3 }
  0x1c   : > { %1598 = shalt.err (!%p1595_p9)
}
  0x1d   : > { %s2134_s12 = smov 128   ;;  %s2135_s13 = smov 8  }
  0x1e   : > { %1517 = dma.hbm_to_vmem [thread:$0]  (!%p1815_p11), %s2130_s4, 2048, %s207_s7, [#allocation6], %s2134_s12, %s2134_s12, %s2135_s13  }
  0x1f   : > { %s1610_s16 = scalar_lea.vmem %s220_s10, 2048  ;;  %p1618_p10 = scmp.lt.s32.totalorder %s220_s10, %s220_s10 }
  0x20   : > { %p1611_p13 = scmp.ne.s32.totalorder %s220_s10, %s1610_s16  ;;  %p1619_p3 = scmp.lt.s32.totalorder %s1610_s16, %s1610_s16 }
  0x22   : > { %p1613_p0 = pnand %p1611_p13, %p1575_p12  ;;  %p1620_p7 = por %p1619_p3, %p1618_p10 }
  0x24   : > { %p1614_p5 = pneg %p1613_p0 }
  0x26   : > { %p1621_p9 = pnand %p1620_p7, %p1614_p5 }
  0x28   : > { %1624 = shalt.err (!%p1621_p9)
}
  0x29   : > { %1520 = dma.hbm_to_vmem [thread:$0]  (!%p1815_p11), %s2131_s5, 2048, %s220_s10, [#allocation6], %s2134_s12, %s2134_s12, %s2135_s13  }
  0x2a   : > { %s1844_s19 = sadd.s32 1, %s1721_s24   ;;  %s30_s20 = sadd.s32 1, %s1717_s23 }
  0x2b   : > { %s27_s26 = ssub.s32 %s1721_s24, %s1844_s19  ;;  %p37_p12 = scmp.ne.s32.totalorder %s1717_s23, %s1713_s22 }
  0x2c   : > { %p28_p13 = scmp.eq.s32.totalorder %s27_s26, 0  ;;  %p38_p0 = scmp.eq.s32.totalorder %s1721_s24, 0 }
  0x2d   : > { %p1854_p5 = por %p172_p2, %p37_p12  ;;  %p1531_p10 = scmp.lt.s32.totalorder %s1721_s24, 2 }
  0x2e   : > { %s1860_s7 = scalar_select %p28_p13, %s1717_s23, %s30_s20  }
  0x2f   : > { %s2143_s30 = scalar_select %p1854_p5, 1, 0 }
  0x30   : > { %p39_p3 = por %p38_p0, %p37_p12  ;;  %s233_s8 = sand.u32 1, %s1717_s23  }
  0x31   : > { %s1187_s9 = sshll.u32 %s233_s8, 4  ;;  %s1232_s10 = sshll.u32 %s1721_s24, 8 }
  0x32   : > { %s1867_s15 = scalar_lea.hbm %s2126_s0, %s1232_s10  ;;  %s237_s16 = scalar_lea.vmem [#allocation2], %s1187_s9 }
  0x33   : > { %s244_s17 = sshll.u32 %s237_s16, 4  ;;  %p1871_p2 = pnand %p1531_p10, %p39_p3  ;;  %s1869_s17 = int_to_ptr.vmem [resolvable:$true] %s244_s17 }
  0x34   : > { %s1875_s20 = scalar_lea.sflag [#allocation3], %s233_s8  ;;  %s1625_s26 = scalar_lea.hbm %s1867_s15, 256 }
  0x35   : > { %p1626_p11 = scmp.ne.s32.totalorder %s1867_s15, %s1625_s26  ;;  %p1627_p7 = pneg %p1871_p2 }
  0x36   : > { %s1630_s9 = scalar_lea.hbm %s2126_s0, 512  ;;  %p1631_p13 = scmp.lt.s32.totalorder %s1867_s15, %s2126_s0 }
  0x37   : > { %p1628_p9 = pnand %p1627_p7, %p1626_p11  ;;  %p1632_p0 = scmp.lt.s32.totalorder %s1630_s9, %s1625_s26 }
  0x39   : > { %p1629_p12 = pneg %p1628_p9  ;;  %p1633_p10 = por %p1632_p0, %p1631_p13 }
  0x3b   : > { %p1634_p3 = pnand %p1633_p10, %p1629_p12 }
  0x3d   : > { %1637 = shalt.err (!%p1634_p3)
}
  0x3e   : > { %s1638_s8 = scalar_lea.vmem %s1869_s17, 256  ;;  %s1727_s12 = smov [#allocation2]  }
  0x3f   : > { %p1639_p1 = scmp.ne.s32.totalorder %s1869_s17, %s1638_s8  ;;  %s1643_s13 = sshll.u32 %s1727_s12, 4  ;;  %s1644_s13 = int_to_ptr.vmem [resolvable:$false] %s1643_s13 }
  0x40   : > { %s1645_s10 = scalar_lea.vmem %s1644_s13, 512  ;;  %p1646_p9 = scmp.lt.s32.totalorder %s1869_s17, %s1644_s13 }
  0x41   : > { %p1641_p6 = pnand %p1639_p1, %p1627_p7  ;;  %p1647_p5 = scmp.lt.s32.totalorder %s1645_s10, %s1638_s8 }
  0x43   : > { %p1642_p11 = pneg %p1641_p6  ;;  %p1648_p4 = por %p1647_p5, %p1646_p9 }
  0x45   : > { %p1649_p8 = pnand %p1648_p4, %p1642_p11 }
  0x47   : > { %1652 = shalt.err (!%p1649_p8)
}
  0x48   : > { %s2145_s26 = smov 8   ;;  %s2146_s11 = smov 128  }
  0x49   : > { %1524 = dma.hbm_to_vmem [thread:$0]  (!%p1871_p2), %s1867_s15, 256, %s1869_s17, %s1875_s20, %s2146_s11, %s2146_s11, %s2145_s26  }
  0x4a   : > { %p2147_p1 = scmp.ne.s32.totalorder %s2141_s29, 0 }
  0x4b   : > { %s1902_s12 = sand.u32 (!%p2147_p1), 1, %s1713_s22   ;;  %p2148_p4 = scmp.ne.s32.totalorder (!%p2147_p1), %s2139_s27, 0 }
  0x4c   : > { %256 = sbr.rel (%p2147_p1) target bundleno = 974 (0x3ce), region = 44  ;;  %s1191_s13 = sshll.u32 (!%p2147_p1), %s1902_s12, 4 }
  0x4d   : > { %s259_s9 = scalar_lea.sflag (!%p2147_p1), [#allocation3], %s1902_s12  ;;  %s262_s14 = scalar_lea.vmem (!%p2147_p1), [#allocation2], %s1191_s13 }
  0x51   : > { %1696 = dma.done.wait (%p2148_p4), %s259_s9, 256  }
  0x52   : > { %1698 = vsyncadd (%p2148_p4), %s259_s9, 4294967040  ;;  %p2149_p6 = scmp.eq.s32.totalorder %s1787_s25, 0 }
  0x54   : > { %1700 = dma.done.wait (%p2149_p6), [#allocation6], 4096   ;;  %p2150_p8 = pmov %p2149_p6 }
  0x55   : > { %vm367_vm0 = vcmask 130048   ;;  %v366_v0 = vld [vmem:[%s262_s14 + $0x8] sm:$0xff]  ;;  %v365_v1 = vld [vmem:[%s262_s14] sm:$0xff]  ;;  %s1194_s9 = sshll.u32 %s1902_s12, 7  ;;  %s1233_s29 = sshll.u32 %s1787_s25, 11 }
  0x56   : > { %1702 = vsyncadd (%p2150_p8), [#allocation6], 4294963200  ;;  %v315_v2 = vld [vmem:[%s2128_s2] sm:$0xff]  ;;  %1334 = vmatprep.subr.mxu0 %v366_v0  ;;  %v316_v3 = vld [vmem:[%s2128_s2 + $0x8] sm:$0xff]  ;;  %s2058_s14 = scalar_lea.vmem [#allocation8], %s1194_s9  ;;  %s2079_s18 = scalar_lea.hbm %s2132_s6, %s1233_s29 }
  0x57   : > { %1338 = vmatprep.mubr.msk.f32.mxu0 %vm367_vm0, %v315_v2  ;;  %1335 = vmatpush3.msra.mxu0 %v366_v0  ;;  %v317_v4 = vld [vmem:[%s2128_s2 + $0x10] sm:$0xff]  ;;  %v318_v5 = vld [vmem:[%s2128_s2 + $0x18] sm:$0xff]  ;;  %v319_v6 = vld [vmem:[%s2128_s2 + $0x20] sm:$0xff]  ;;  %s1090_s15 = sshll.u32 %s2058_s14, 4  ;;  %s1077_s20 = scalar_lea.sflag [#allocation4], %s1902_s12  ;;  %s2081_s15 = int_to_ptr.vmem [resolvable:$true] %s1090_s15 }
  0x58   : > { %1336 = vmatprep.subr.mxu0 %v365_v1  ;;  %v320_v7 = vld [vmem:[%s2128_s2 + $0x28] sm:$0xff]  ;;  %v321_v8 = vld [vmem:[%s2128_s2 + $0x30] sm:$0xff]  ;;  %v322_v9 = vld [vmem:[%s2128_s2 + $0x38] sm:$0xff]  ;;  %s1653_s16 = scalar_lea.vmem %s2081_s15, 2048  ;;  %p2151_p2 = scmp.ne.s32.totalorder %s2143_s30, 0 }
  0x59   : > { %1337 = vmatpush3.msra.mxu0 %v365_v1  ;;  %v323_v10 = vld [vmem:[%s2128_s2 + $0x40] sm:$0xff]  ;;  %v324_v11 = vld [vmem:[%s2128_s2 + $0x48] sm:$0xff]  ;;  %v325_v12 = vld [vmem:[%s2128_s2 + $0x50] sm:$0xff]  ;;  %p1654_p5 = scmp.ne.s32.totalorder %s2081_s15, %s1653_s16  ;;  %s1728_s25 = smov [#allocation8]  }
  0x5a   : > { %1339 = vmatmul.mubr.msk.f32.vlgmr.msra.gmra.mxu0 %vm367_vm0, %v316_v3  ;;  %v326_v13 = vld [vmem:[%s2128_s2 + $0x58] sm:$0xff]  ;;  %v327_v14 = vld [vmem:[%s2128_s2 + $0x60] sm:$0xff]  ;;  %v328_v15 = vld [vmem:[%s2128_s2 + $0x68] sm:$0xff]  ;;  %s1657_s8 = sshll.u32 %s1728_s25, 4  ;;  %s1658_s8 = int_to_ptr.vmem [resolvable:$false] %s1657_s8 }
  0x5b   : > { %1341 = vmatprep.mubr.msk.f32.mxu0 %vm367_vm0, %v317_v4  ;;  %v329_v16 = vld [vmem:[%s2128_s2 + $0x70] sm:$0xff]  ;;  %v330_v17 = vld [vmem:[%s2128_s2 + $0x78] sm:$0xff]  ;;  %v332_v18 = vld [vmem:[%s2129_s3 + $0x8] sm:$0xff]  ;;  %p1655_p7 = pnand %p1654_p5, %p2151_p2  ;;  %s1659_s10 = scalar_lea.vmem %s1658_s8, 4096 }
  0x5c   : > { %1362 = vmatprep.subr.mxu1 %v332_v18  ;;  %v331_v19 = vld [vmem:[%s2129_s3] sm:$0xff]  ;;  %v364_v37 = vld [vmem:[#allocation7 + $0x78] sm:$0xff]  ;;  %v363_v38 = vld [vmem:[#allocation7 + $0x70] sm:$0xff]  ;;  %p1660_p13 = scmp.lt.s32.totalorder %s2081_s15, %s1658_s8  ;;  %p1661_p0 = scmp.lt.s32.totalorder %s1659_s10, %s1653_s16 }
  0x5d   : > { %1363 = vmatpush3.msra.mxu1 %v332_v18  ;;  %v333_v36 = vld [vmem:[#allocation5] sm:$0xff]  ;;  %v362_v39 = vld [vmem:[#allocation7 + $0x68] sm:$0xff]  ;;  %v360_v41 = vld [vmem:[#allocation7 + $0x58] sm:$0xff]  ;;  %p1656_p12 = pneg %p1655_p7 }
  0x5e   : > { %1342 = vmatmul.mubr.msk.f32.gmra.mxu0 %vm367_vm0, %v318_v5  ;;  %1364 = vmatprep.subr.mxu1 %v331_v19  ;;  %v361_v40 = vld [vmem:[#allocation7 + $0x60] sm:$0xff]  ;;  %v359_v42 = vld [vmem:[#allocation7 + $0x50] sm:$0xff]  ;;  %v358_v43 = vld [vmem:[#allocation7 + $0x48] sm:$0xff]  ;;  %p1662_p10 = por %p1661_p0, %p1660_p13 }
  0x5f   : > { %1344 = vmatprep.mubr.msk.f32.mxu0 %vm367_vm0, %v319_v6  ;;  %1365 = vmatpush3.msra.mxu1 %v331_v19  ;;  %v357_v44 = vld [vmem:[#allocation7 + $0x40] sm:$0xff]  ;;  %v356_v45 = vld [vmem:[#allocation7 + $0x38] sm:$0xff]  ;;  %v355_v46 = vld [vmem:[#allocation7 + $0x30] sm:$0xff] }
  0x60   : > { %1446 = vmatprep.subr.mxu1 %v364_v37  ;;  %v354_v47 = vld [vmem:[#allocation7 + $0x28] sm:$0xff]  ;;  %v353_v48 = vld [vmem:[#allocation7 + $0x20] sm:$0xff]  ;;  %v352_v49 = vld [vmem:[#allocation7 + $0x18] sm:$0xff]  ;;  %p1663_p3 = pnand %p1662_p10, %p1656_p12 }
  0x61   : > { %v351_v50 = vld [vmem:[#allocation7 + $0x10] sm:$0xff]  ;;  %v314_v1 = vld [vmem:[%s2127_s1 + $0x78] sm:$0xff]  ;;  %v312_v5 = vld [vmem:[%s2127_s1 + $0x68] sm:$0xff] }
  0x62   : > { %1345 = vmatmul.mubr.msk.f32.gmra.mxu0 %vm367_vm0, %v320_v7  ;;  %v313_v3 = vld [vmem:[%s2127_s1 + $0x70] sm:$0xff]  ;;  %v306_v18 = vld [vmem:[%s2127_s1 + $0x38] sm:$0xff] }
  0x63   : > { %1347 = vmatprep.mubr.msk.f32.mxu0 %vm367_vm0, %v321_v8  ;;  %v311_v8 = vld [vmem:[%s2127_s1 + $0x60] sm:$0xff] }
  0x66   : > { %1348 = vmatmul.mubr.msk.f32.gmra.mxu0 %vm367_vm0, %v322_v9 }
  0x67   : > { %1350 = vmatprep.mubr.msk.f32.mxu0 %vm367_vm0, %v323_v10  ;;  %v310_v10 = vld [vmem:[%s2127_s1 + $0x58] sm:$0xff] }
  0x6a   : > { %1351 = vmatmul.mubr.msk.f32.gmra.mxu0 %vm367_vm0, %v324_v11 }
  0x6b   : > { %1353 = vmatprep.mubr.msk.f32.mxu0 %vm367_vm0, %v325_v12  ;;  %v309_v12 = vld [vmem:[%s2127_s1 + $0x50] sm:$0xff] }
  0x6e   : > { %1354 = vmatmul.mubr.msk.f32.gmra.mxu0 %vm367_vm0, %v326_v13 }
  0x6f   : > { %1356 = vmatprep.mubr.msk.f32.mxu0 %vm367_vm0, %v327_v14  ;;  %v308_v14 = vld [vmem:[%s2127_s1 + $0x48] sm:$0xff] }
  0x72   : > { %1357 = vmatmul.mubr.msk.f32.gmra.mxu0 %vm367_vm0, %v328_v15 }
  0x73   : > { %1359 = vmatprep.mubr.msk.f32.mxu0 %vm367_vm0, %v329_v16  ;;  %v307_v16 = vld [vmem:[%s2127_s1 + $0x40] sm:$0xff] }
  0x76   : > { %1360 = vmatmul.mubr.msk.f32.gmra.mxu0 %vm367_vm0, %v330_v17 }
  0x77   : > { %1422 = vmatprep.mubr.f32.mxu0 %v333_v36  ;;  %v335_v36 = vld [vmem:[#allocation5 + $0x10] sm:$0xff] }
 0x11a   : > { %v1340_v20 = vpop.f32.mrf.mxu0 }
 0x11c   : > { %v482_v21 = vpop.f32.mrf.mxu0 }
 0x11d   : > { %1366 = vmatprep.mubr.msk.f32.mxu1 %vm367_vm0, %v482_v21 }
 0x11e   : > { %v1343_v22 = vpop.f32.mrf.mxu0  ;;  %1367 = vmatmul.mubr.msk.f32.vlgmr.msra.gmra.mxu1 %vm367_vm0, %v1340_v20  ;;  %v305_v20 = vld [vmem:[%s2127_s1 + $0x30] sm:$0xff] }
 0x11f   : > { %1447 = vmatpush3.msra.mxu1 %v364_v37  ;;  %v336_v37 = vld [vmem:[#allocation5 + $0x18] sm:$0xff] }
 0x120   : > { %v492_v23 = vpop.f32.mrf.mxu0  ;;  %1448 = vmatprep.subr.mxu1 %v363_v38 }
 0x121   : > { %1369 = vmatprep.mubr.msk.f32.mxu1 %vm367_vm0, %v492_v23  ;;  %1449 = vmatpush3.msra.mxu1 %v363_v38  ;;  %v337_v38 = vld [vmem:[#allocation5 + $0x20] sm:$0xff] }
 0x122   : > { %v1346_v24 = vpop.f32.mrf.mxu0  ;;  %1370 = vmatmul.mubr.msk.f32.gmra.mxu1 %vm367_vm0, %v1343_v22  ;;  %1450 = vmatprep.subr.mxu1 %v362_v39  ;;  %v304_v22 = vld [vmem:[%s2127_s1 + $0x28] sm:$0xff] }
 0x123   : > { %1451 = vmatpush3.msra.mxu1 %v362_v39  ;;  %v338_v39 = vld [vmem:[#allocation5 + $0x28] sm:$0xff] }
 0x124   : > { %v502_v25 = vpop.f32.mrf.mxu0  ;;  %1452 = vmatprep.subr.mxu1 %v361_v40 }
 0x125   : > { %1372 = vmatprep.mubr.msk.f32.mxu1 %vm367_vm0, %v502_v25  ;;  %1453 = vmatpush3.msra.mxu1 %v361_v40  ;;  %v339_v40 = vld [vmem:[#allocation5 + $0x30] sm:$0xff] }
 0x126   : > { %v1349_v26 = vpop.f32.mrf.mxu0  ;;  %1373 = vmatmul.mubr.msk.f32.gmra.mxu1 %vm367_vm0, %v1346_v24  ;;  %1454 = vmatprep.subr.mxu1 %v360_v41  ;;  %v303_v24 = vld [vmem:[%s2127_s1 + $0x20] sm:$0xff] }
 0x127   : > { %1455 = vmatpush3.msra.mxu1 %v360_v41  ;;  %v340_v41 = vld [vmem:[#allocation5 + $0x38] sm:$0xff] }
 0x128   : > { %v512_v27 = vpop.f32.mrf.mxu0  ;;  %1456 = vmatprep.subr.mxu1 %v359_v42 }
 0x129   : > { %1375 = vmatprep.mubr.msk.f32.mxu1 %vm367_vm0, %v512_v27  ;;  %1457 = vmatpush3.msra.mxu1 %v359_v42  ;;  %v341_v42 = vld [vmem:[#allocation5 + $0x40] sm:$0xff] }
 0x12a   : > { %v1352_v28 = vpop.f32.mrf.mxu0  ;;  %1376 = vmatmul.mubr.msk.f32.gmra.mxu1 %vm367_vm0, %v1349_v26  ;;  %1458 = vmatprep.subr.mxu1 %v358_v43  ;;  %v302_v26 = vld [vmem:[%s2127_s1 + $0x18] sm:$0xff] }
 0x12b   : > { %1459 = vmatpush3.msra.mxu1 %v358_v43  ;;  %v342_v43 = vld [vmem:[#allocation5 + $0x48] sm:$0xff] }
 0x12c   : > { %v522_v29 = vpop.f32.mrf.mxu0  ;;  %1460 = vmatprep.subr.mxu1 %v357_v44 }
 0x12d   : > { %1378 = vmatprep.mubr.msk.f32.mxu1 %vm367_vm0, %v522_v29  ;;  %1461 = vmatpush3.msra.mxu1 %v357_v44  ;;  %v343_v44 = vld [vmem:[#allocation5 + $0x50] sm:$0xff] }
 0x12e   : > { %v1355_v30 = vpop.f32.mrf.mxu0  ;;  %1379 = vmatmul.mubr.msk.f32.gmra.mxu1 %vm367_vm0, %v1352_v28  ;;  %1462 = vmatprep.subr.mxu1 %v356_v45  ;;  %v301_v28 = vld [vmem:[%s2127_s1 + $0x10] sm:$0xff] }
 0x12f   : > { %1463 = vmatpush3.msra.mxu1 %v356_v45  ;;  %v344_v45 = vld [vmem:[#allocation5 + $0x58] sm:$0xff] }
 0x130   : > { %v532_v31 = vpop.f32.mrf.mxu0  ;;  %1464 = vmatprep.subr.mxu1 %v355_v46 }
 0x131   : > { %1381 = vmatprep.mubr.msk.f32.mxu1 %vm367_vm0, %v532_v31  ;;  %1465 = vmatpush3.msra.mxu1 %v355_v46  ;;  %v345_v46 = vld [vmem:[#allocation5 + $0x60] sm:$0xff] }
 0x132   : > { %v1358_v32 = vpop.f32.mrf.mxu0  ;;  %1382 = vmatmul.mubr.msk.f32.gmra.mxu1 %vm367_vm0, %v1355_v30  ;;  %1466 = vmatprep.subr.mxu1 %v354_v47  ;;  %v300_v30 = vld [vmem:[%s2127_s1 + $0x8] sm:$0xff] }
 0x133   : > { %1467 = vmatpush3.msra.mxu1 %v354_v47  ;;  %v346_v47 = vld [vmem:[#allocation5 + $0x68] sm:$0xff] }
 0x134   : > { %v542_v33 = vpop.f32.mrf.mxu0  ;;  %1468 = vmatprep.subr.mxu1 %v353_v48 }
 0x135   : > { %1384 = vmatprep.mubr.msk.f32.mxu1 %vm367_vm0, %v542_v33  ;;  %1469 = vmatpush3.msra.mxu1 %v353_v48  ;;  %v347_v48 = vld [vmem:[#allocation5 + $0x70] sm:$0xff] }
 0x136   : > { %v1361_v34 = vpop.f32.mrf.mxu0  ;;  %1385 = vmatmul.mubr.msk.f32.gmra.mxu1 %vm367_vm0, %v1358_v32  ;;  %1470 = vmatprep.subr.mxu1 %v352_v49  ;;  %v299_v32 = vld [vmem:[%s2127_s1] sm:$0xff] }
 0x137   : > { %1471 = vmatpush3.msra.mxu1 %v352_v49  ;;  %v348_v49 = vld [vmem:[#allocation5 + $0x78] sm:$0xff] }
 0x138   : > { %v552_v35 = vpop.f32.mrf.mxu0  ;;  %1472 = vmatprep.subr.mxu1 %v351_v50 }
 0x139   : > { %1387 = vmatprep.mubr.msk.f32.mxu1 %vm367_vm0, %v552_v35  ;;  %1473 = vmatpush3.msra.mxu1 %v351_v50  ;;  %v334_v35 = vld [vmem:[#allocation5 + $0x8] sm:$0xff] }
 0x13a   : > { %1388 = vmatmul.mubr.msk.f32.gmra.mxu1 %vm367_vm0, %v1361_v34  ;;  %v350_v50 = vld [vmem:[#allocation7 + $0x8] sm:$0xff] }
 0x13b   : > { %1474 = vmatprep.subr.mxu1 %v350_v50 }
 0x13c   : > { %1475 = vmatpush3.msra.mxu1 %v350_v50 }
 0x1de   : > { %v2000_v51 = vpop.f32.mrf.mxu1 }
 0x1df   : > { %v755_v33 = vmul.f32 %v2000_v51, %v300_v30  ;;  %v349_v51 = vld [vmem:[#allocation7] sm:$0xff] }
 0x1e0   : > { %v2002_v52 = vpop.f32.mrf.mxu1  ;;  %1476 = vmatprep.subr.mxu1 %v349_v51 }
 0x1e1   : > { %v754_v34 = vmul.f32 %v2002_v52, %v299_v32  ;;  %1477 = vmatpush3.msra.mxu1 %v349_v51 }
 0x1e2   : > { %v1371_v53 = vpop.f32.mrf.mxu1 }
 0x1e3   : > { %v757_v29 = vmul.f32 %v1371_v53, %v302_v26 }
 0x1e4   : > { %v2004_v54 = vpop.f32.mrf.mxu1 }
 0x1e5   : > { %v756_v31 = vmul.f32 %v2004_v54, %v301_v28 }
 0x1e6   : > { %v1374_v55 = vpop.f32.mrf.mxu1 }
 0x1e7   : > { %v759_v25 = vmul.f32 %v1374_v55, %v304_v22 }
 0x1e8   : > { %v695_v56 = vpop.f32.mrf.mxu1 }
 0x1e9   : > { %v758_v27 = vmul.f32 %v695_v56, %v303_v24 }
 0x1ea   : > { %v1377_v57 = vpop.f32.mrf.mxu1 }
 0x1eb   : > { %v761_v21 = vmul.f32 %v1377_v57, %v306_v18 }
 0x1ec   : > { %v705_v58 = vpop.f32.mrf.mxu1 }
 0x1ed   : > { %v760_v23 = vmul.f32 %v705_v58, %v305_v20 }
 0x1ee   : > { %v1380_v59 = vpop.f32.mrf.mxu1 }
 0x1ef   : > { %v763_v17 = vmul.f32 %v1380_v59, %v308_v14 }
 0x1f0   : > { %v715_v60 = vpop.f32.mrf.mxu1 }
 0x1f1   : > { %v762_v19 = vmul.f32 %v715_v60, %v307_v16 }
 0x1f2   : > { %v1383_v61 = vpop.f32.mrf.mxu1 }
 0x1f3   : > { %v765_v13 = vmul.f32 %v1383_v61, %v310_v10 }
 0x1f4   : > { %v725_v62 = vpop.f32.mrf.mxu1 }
 0x1f5   : > { %v764_v15 = vmul.f32 %v725_v62, %v309_v12 }
 0x1f6   : > { %v1386_v63 = vpop.f32.mrf.mxu1 }
 0x1f7   : > { %v767_v9 = vmul.f32 %v1386_v63, %v312_v5 }
 0x1f8   : > { %v735_v0 = vpop.f32.mrf.mxu1 }
 0x1f9   : > { %v766_v11 = vmul.f32 %v735_v0, %v311_v8 }
 0x1fa   : > { %v1389_v2 = vpop.f32.mrf.mxu1 }
 0x1fb   : > { %v769_v4 = vmul.f32 %v1389_v2, %v314_v1 }
 0x1fc   : > { %v745_v6 = vpop.f32.mrf.mxu1 }
 0x1fd   : > { %v768_v7 = vmul.f32 %v745_v6, %v313_v3  ;;  %1390 = vmatprep.subr.mxu0 %v769_v4 }
 0x1fe   : > { %1391 = vmatpush3.msra.mxu0 %v769_v4 }
 0x1ff   : > { %1392 = vmatprep.subr.mxu0 %v768_v7 }
 0x200   : > { %1393 = vmatpush3.msra.mxu0 %v768_v7 }
 0x201   : > { %1394 = vmatprep.subr.mxu0 %v767_v9 }
 0x202   : > { %1395 = vmatpush3.msra.mxu0 %v767_v9 }
 0x203   : > { %1396 = vmatprep.subr.mxu0 %v766_v11 }
 0x204   : > { %1397 = vmatpush3.msra.mxu0 %v766_v11 }
 0x205   : > { %1398 = vmatprep.subr.mxu0 %v765_v13 }
 0x206   : > { %1399 = vmatpush3.msra.mxu0 %v765_v13 }
 0x207   : > { %1400 = vmatprep.subr.mxu0 %v764_v15 }
 0x208   : > { %1401 = vmatpush3.msra.mxu0 %v764_v15 }
 0x209   : > { %1402 = vmatprep.subr.mxu0 %v763_v17 }
 0x20a   : > { %1403 = vmatpush3.msra.mxu0 %v763_v17 }
 0x20b   : > { %1404 = vmatprep.subr.mxu0 %v762_v19 }
 0x20c   : > { %1405 = vmatpush3.msra.mxu0 %v762_v19 }
 0x20d   : > { %1406 = vmatprep.subr.mxu0 %v761_v21 }
 0x20e   : > { %1407 = vmatpush3.msra.mxu0 %v761_v21 }
 0x20f   : > { %1408 = vmatprep.subr.mxu0 %v760_v23 }
 0x210   : > { %1409 = vmatpush3.msra.mxu0 %v760_v23 }
 0x211   : > { %1410 = vmatprep.subr.mxu0 %v759_v25 }
 0x212   : > { %1411 = vmatpush3.msra.mxu0 %v759_v25 }
 0x213   : > { %1412 = vmatprep.subr.mxu0 %v758_v27 }
 0x214   : > { %1413 = vmatpush3.msra.mxu0 %v758_v27 }
 0x215   : > { %1414 = vmatprep.subr.mxu0 %v757_v29 }
 0x216   : > { %1415 = vmatpush3.msra.mxu0 %v757_v29 }
 0x217   : > { %1416 = vmatprep.subr.mxu0 %v756_v31 }
 0x218   : > { %1417 = vmatpush3.msra.mxu0 %v756_v31 }
 0x219   : > { %1418 = vmatprep.subr.mxu0 %v755_v33 }
 0x21a   : > { %1419 = vmatpush3.msra.mxu0 %v755_v33 }
 0x21b   : > { %1420 = vmatprep.subr.mxu0 %v754_v34 }
 0x21c   : > { %1421 = vmatpush3.msra.mxu0 %v754_v34 }
 0x21d   : > { %1423 = vmatmul.mubr.f32.vlgmr.msra.gmra.mxu0 %v334_v35 }
 0x21e   : > { %1425 = vmatprep.mubr.f32.mxu0 %v335_v36 }
 0x221   : > { %1426 = vmatmul.mubr.f32.gmra.mxu0 %v336_v37 }
 0x222   : > { %1428 = vmatprep.mubr.f32.mxu0 %v337_v38 }
 0x225   : > { %1429 = vmatmul.mubr.f32.gmra.mxu0 %v338_v39 }
 0x226   : > { %1431 = vmatprep.mubr.f32.mxu0 %v339_v40 }
 0x229   : > { %1432 = vmatmul.mubr.f32.gmra.mxu0 %v340_v41 }
 0x22a   : > { %1434 = vmatprep.mubr.f32.mxu0 %v341_v42 }
 0x22d   : > { %1435 = vmatmul.mubr.f32.gmra.mxu0 %v342_v43 }
 0x22e   : > { %1437 = vmatprep.mubr.f32.mxu0 %v343_v44 }
 0x231   : > { %1438 = vmatmul.mubr.f32.gmra.mxu0 %v344_v45 }
 0x232   : > { %1440 = vmatprep.mubr.f32.mxu0 %v345_v46 }
 0x235   : > { %1441 = vmatmul.mubr.f32.gmra.mxu0 %v346_v47 }
 0x236   : > { %1443 = vmatprep.mubr.f32.mxu0 %v347_v48 }
 0x239   : > { %1444 = vmatmul.mubr.f32.gmra.mxu0 %v348_v49 }
 0x2dd   : > { %v1424_v52 = vpop.f32.mrf.mxu0 }
 0x2df   : > { %v836_v53 = vpop.f32.mrf.mxu0 }
 0x2e0   : > { %1478 = vmatprep.mubr.f32.mxu1 %v836_v53 }
 0x2e1   : > { %v1427_v54 = vpop.f32.mrf.mxu0  ;;  %1479 = vmatmul.mubr.f32.vlgmr.msra.gmra.mxu1 %v1424_v52 }
 0x2e3   : > { %v846_v55 = vpop.f32.mrf.mxu0 }
 0x2e4   : > { %1481 = vmatprep.mubr.f32.mxu1 %v846_v55 }
 0x2e5   : > { %v1430_v56 = vpop.f32.mrf.mxu0  ;;  %1482 = vmatmul.mubr.f32.gmra.mxu1 %v1427_v54 }
 0x2e7   : > { %v856_v57 = vpop.f32.mrf.mxu0 }
 0x2e8   : > { %1484 = vmatprep.mubr.f32.mxu1 %v856_v57 }
 0x2e9   : > { %v1433_v58 = vpop.f32.mrf.mxu0  ;;  %1485 = vmatmul.mubr.f32.gmra.mxu1 %v1430_v56 }
 0x2eb   : > { %v866_v59 = vpop.f32.mrf.mxu0 }
 0x2ec   : > { %1487 = vmatprep.mubr.f32.mxu1 %v866_v59 }
 0x2ed   : > { %v1436_v60 = vpop.f32.mrf.mxu0  ;;  %1488 = vmatmul.mubr.f32.gmra.mxu1 %v1433_v58 }
 0x2ef   : > { %v876_v61 = vpop.f32.mrf.mxu0 }
 0x2f0   : > { %1490 = vmatprep.mubr.f32.mxu1 %v876_v61 }
 0x2f1   : > { %v1439_v62 = vpop.f32.mrf.mxu0  ;;  %1491 = vmatmul.mubr.f32.gmra.mxu1 %v1436_v60 }
 0x2f3   : > { %v886_v63 = vpop.f32.mrf.mxu0 }
 0x2f4   : > { %1493 = vmatprep.mubr.f32.mxu1 %v886_v63 }
 0x2f5   : > { %v1442_v0 = vpop.f32.mrf.mxu0  ;;  %1494 = vmatmul.mubr.f32.gmra.mxu1 %v1439_v62 }
 0x2f7   : > { %v896_v1 = vpop.f32.mrf.mxu0 }
 0x2f8   : > { %1496 = vmatprep.mubr.f32.mxu1 %v896_v1 }
 0x2f9   : > { %v1445_v2 = vpop.f32.mrf.mxu0  ;;  %1497 = vmatmul.mubr.f32.gmra.mxu1 %v1442_v0 }
 0x2fb   : > { %v906_v3 = vpop.f32.mrf.mxu0 }
 0x2fc   : > { %1499 = vmatprep.mubr.f32.mxu1 %v906_v3 }
 0x2fd   : > { %1500 = vmatmul.mubr.f32.gmra.mxu1 %v1445_v2 }
 0x3a1   : > { %v1480_v4 = vpop.f32.mrf.mxu1 }
 0x3a2   : > { %1061 = vst [vmem:[%s2058_s14 + $0x8] sm:$0xff] %v1480_v4 }
 0x3a3   : > { %v981_v5 = vpop.f32.mrf.mxu1 }
 0x3a4   : > { %1060 = vst [vmem:[%s2058_s14] sm:$0xff] %v981_v5 }
 0x3a5   : > { %v1483_v6 = vpop.f32.mrf.mxu1 }
 0x3a6   : > { %1063 = vst [vmem:[%s2058_s14 + $0x18] sm:$0xff] %v1483_v6 }
 0x3a7   : > { %v991_v7 = vpop.f32.mrf.mxu1 }
 0x3a8   : > { %1062 = vst [vmem:[%s2058_s14 + $0x10] sm:$0xff] %v991_v7 }
 0x3a9   : > { %v1486_v8 = vpop.f32.mrf.mxu1 }
 0x3aa   : > { %1065 = vst [vmem:[%s2058_s14 + $0x28] sm:$0xff] %v1486_v8 }
 0x3ab   : > { %v1001_v9 = vpop.f32.mrf.mxu1 }
 0x3ac   : > { %1064 = vst [vmem:[%s2058_s14 + $0x20] sm:$0xff] %v1001_v9 }
 0x3ad   : > { %v1489_v10 = vpop.f32.mrf.mxu1 }
 0x3ae   : > { %1067 = vst [vmem:[%s2058_s14 + $0x38] sm:$0xff] %v1489_v10 }
 0x3af   : > { %v1011_v11 = vpop.f32.mrf.mxu1 }
 0x3b0   : > { %1066 = vst [vmem:[%s2058_s14 + $0x30] sm:$0xff] %v1011_v11 }
 0x3b1   : > { %v1492_v12 = vpop.f32.mrf.mxu1 }
 0x3b2   : > { %1069 = vst [vmem:[%s2058_s14 + $0x48] sm:$0xff] %v1492_v12 }
 0x3b3   : > { %v1021_v13 = vpop.f32.mrf.mxu1 }
 0x3b4   : > { %1068 = vst [vmem:[%s2058_s14 + $0x40] sm:$0xff] %v1021_v13 }
 0x3b5   : > { %v1495_v14 = vpop.f32.mrf.mxu1 }
 0x3b6   : > { %1071 = vst [vmem:[%s2058_s14 + $0x58] sm:$0xff] %v1495_v14 }
 0x3b7   : > { %v1031_v15 = vpop.f32.mrf.mxu1 }
 0x3b8   : > { %1070 = vst [vmem:[%s2058_s14 + $0x50] sm:$0xff] %v1031_v15 }
 0x3b9   : > { %v1498_v16 = vpop.f32.mrf.mxu1 }
 0x3ba   : > { %1073 = vst [vmem:[%s2058_s14 + $0x68] sm:$0xff] %v1498_v16 }
 0x3bb   : > { %v1041_v17 = vpop.f32.mrf.mxu1 }
 0x3bc   : > { %1072 = vst [vmem:[%s2058_s14 + $0x60] sm:$0xff] %v1041_v17 }
 0x3bd   : > { %v1501_v18 = vpop.f32.mrf.mxu1 }
 0x3be   : > { %1075 = vst [vmem:[%s2058_s14 + $0x78] sm:$0xff] %v1501_v18 }
 0x3bf   : > { %v1051_v19 = vpop.f32.mrf.mxu1 }
 0x3c0   : > { %1074 = vst [vmem:[%s2058_s14 + $0x70] sm:$0xff] %v1051_v19 }
 0x3c1   : > { %1666 = shalt.err (!%p1663_p3)
}
 0x3c2   : > { %s1667_s26 = scalar_lea.hbm %s2079_s18, 2048  ;;  %s1671_s9 = scalar_lea.hbm %s2132_s6, 4096 }
 0x3c3   : > { %p1668_p11 = scmp.ne.s32.totalorder %s2079_s18, %s1667_s26  ;;  %p1672_p4 = scmp.lt.s32.totalorder %s2079_s18, %s2132_s6 }
 0x3c4   : > { %p1673_p6 = scmp.lt.s32.totalorder %s1671_s9, %s1667_s26 }
 0x3c5   : > { %p1669_p9 = pnand %p1668_p11, %p2151_p2 }
 0x3c6   : > { %p1674_p8 = por %p1673_p6, %p1672_p4 }
 0x3c7   : > { %p1670_p1 = pneg %p1669_p9 }
 0x3c9   : > { %p1675_p5 = pnand %p1674_p8, %p1670_p1 }
 0x3cb   : > { %1678 = shalt.err (!%p1675_p5)
}
 0x3cc   : > { %s1729_s17 = smov 128   ;;  %s1730_s27 = smov 8  }
 0x3cd   : > { %1512 = dma.vmem_to_hbm [thread:$0]  (%p2151_p2), %s2081_s15, 2048, %s2079_s18, %s1077_s20, %s1729_s17, %s1729_s17, %s1730_s27  }
 0x3ce PF: > { %s1105_s16 = sand.u32 1, %s1709_s21   ;;  %p2152_p7 = scmp.ne.s32.totalorder %s2140_s28, 0 }
 0x3cf   : > { %p2153_p12 = scmp.ge.s32.totalorder %s1721_s24, 2  ;;  %s1106_s25 = scalar_lea.sflag [#allocation4], %s1105_s16 }
 0x3d1   : > { %p1526_p13 = pnand %p2153_p12, %p2152_p7 }
 0x3d3   : > { %p1527_p0 = pneg %p1526_p13 }
 0x3d5   : > { %1704 = dma.done.wait (%p1527_p0), %s1106_s25, 2048  }
 0x3d6   : > { %1706 = vsyncadd (%p1527_p0), %s1106_s25, 4294965248  ;;  %p20_p10 = scmp.ge.s32.totalorder %s1844_s19, 4   ;;  %s2154_s21 = smov %s1713_s22 }
 0x3d7   : > { %s2155_s22 = smov %s1717_s23  ;;  %s2156_s23 = smov %s1860_s7 }
 0x3d8   : > { %s2157_s24 = smov %s1844_s19  ;;  %22 = sbr.rel (!%p20_p10) target bundleno = 6 (0x6), region = 97 }
 0x3dd   :  { %1111 = vsyncpa [#allocation3], 1 }
 0x3de   :  { %1113 = vsyncpa [#allocation3 + $0x1], 1 }
 0x3df   :  { %1114 = vsyncpa [#allocation6], 1 }
 0x3e0   :  { %1115 = vsyncpa [#allocation4], 1 }
 0x3e1   :  { %1117 = vsyncpa [#allocation4 + $0x1], 1 }

</bundles_post_ra>
